<compile_context>
chip_gen: v5e
topology: v5e:2x2
jax: 0.10.0
libtpu: 0.0.40
codegen_flags: <defaults>
</compile_context>

<pallas_src>
import functools

import jax
import jax.numpy as jnp
from jax import lax
from jax.experimental import pallas as pl
from jax.experimental.pallas import tpu as pltpu


# ----------------------------- Pallas kernel ------------------------------ #

_VMEM_SPEC = pl.BlockSpec(memory_space=pltpu.MemorySpace.VMEM)


def _fused_forward_kernel(*refs, n_layers):
    """Fused MLP: x -> (matmul + bias + relu)*(n_layers-1) -> matmul + bias -> sigmoid.

    refs = (x_ref, w0_ref, b0_ref, w1_ref, b1_ref, ..., o_ref)
      x_ref : [B, D0]         (flattened NCHW board state)
      wi    : [Di, Di+1]      (conv layers are pre-folded dense matrices)
      bi    : [1, Di+1]
      o_ref : [B, 1]
    """
    x_ref = refs[0]
    o_ref = refs[-1]
    wb_refs = refs[1:-1]

    h = x_ref[...]
    for i in range(n_layers):
        w_ref = wb_refs[2 * i]
        b_ref = wb_refs[2 * i + 1]
        y = jnp.dot(h, w_ref[...], preferred_element_type=jnp.float32) + b_ref[...]
        if i < n_layers - 1:
            h = jnp.maximum(y, 0.0)
        else:
            # Stable sigmoid via tanh (EUP slot, no exp-overflow intermediate).
            h = 0.5 * jnp.tanh(0.5 * y) + 0.5
    o_ref[...] = h


# ------------------------------ wrappers ---------------------------------- #

def reversi_cnn_forward(folded_params, x_nchw):
    """Pallas implementation of ReversiCNN.forward (input NCHW, like PyTorch)."""
    B = x_nchw.shape[0]
    x_flat = x_nchw.reshape(B, -1)          # NCHW flatten == torch .view(B, -1)

    args = [x_flat]
    for w, b in folded_params:
        args.append(w)
        args.append(b)
    n_layers = len(folded_params)

    # NOTE: at serving-scale batch add grid=(B//tb,) over the batch with
    # dimension_semantics=("parallel",) to shard across v7x's two TensorCores.
    out = pl.pallas_call(
        functools.partial(_fused_forward_kernel, n_layers=n_layers),
        out_shape=jax.ShapeDtypeStruct((B, 1), jnp.float32),
        in_specs=[_VMEM_SPEC] * len(args),
        out_specs=_VMEM_SPEC,
        compiler_params=pltpu.CompilerParams(
            vmem_limit_bytes=32 * 1024 * 1024),
    )(*args)
    return out.reshape(-1)                  # .view(-1)


# ----------------------- parameter construction --------------------------- #

def cnn_out_size(size, kernel, padding, stride):
    return (size - kernel + 2 * padding) // stride + 1


def init_params(key, size, convs, kernel, linear_sizes):
    """Deterministic synthetic parameters matching ReversiCNN's shapes.

    Conv weights are HWIO, linear weights are [in, out] (PyTorch [out,in].T).
    """
    convs = [2] + list(convs)                      # convs.insert(0, 2)
    s = size
    for _ in convs[1:]:
        s = cnn_out_size(s, kernel, padding=kernel // 2, stride=1)
    lin = [convs[-1] * s * s] + list(linear_sizes) + [1]

    params = {"conv": [], "lin": []}
    for i in range(len(convs) - 1):
        key, k1, k2 = jax.random.split(key, 3)
        w = 0.1 * jax.random.normal(
            k1, (kernel, kernel, convs[i], convs[i + 1]), jnp.float32)  # HWIO
        b = 0.1 * jax.random.normal(k2, (convs[i + 1],), jnp.float32)
        params["conv"].append((w, b))
    for i in range(len(lin) - 1):
        key, k1, k2 = jax.random.split(key, 3)
        w = 0.1 * jax.random.normal(k1, (lin[i], lin[i + 1]), jnp.float32)  # [in,out]
        b = 0.1 * jax.random.normal(k2, (lin[i + 1],), jnp.float32)
        params["lin"].append((w, b))
    return params


def fold_params(params, size, kernel):
    """Fold each same-padded conv on the fixed board into a dense matrix.

    Returns [(W, b_row), ...] for every layer, where every layer is a plain
    matmul on NCHW-flattened activations.  Exact (HIGHEST-precision fold of an
    identity basis), done once at load time.
    """
    H = W = size
    pad = kernel // 2
    folded = []
    for w_hwio, b in params["conv"]:
        KH, KW, Cin, Cout = w_hwio.shape
        eye = jnp.eye(Cin * H * W, dtype=jnp.float32).reshape(Cin * H * W, Cin, H, W)
        basis_out = lax.conv_general_dilated(
            eye, w_hwio, (1, 1), [(pad, pad), (pad, pad)],
            dimension_numbers=("NCHW", "HWIO", "NCHW"),
            precision=lax.Precision.HIGHEST)
        M = basis_out.reshape(Cin * H * W, Cout * H * W)        # NCHW flatten both sides
        b_row = jnp.repeat(b, H * W).reshape(1, Cout * H * W)   # per-channel plane bias
        folded.append((M, b_row))
    for w, b in params["lin"]:
        folded.append((w, b.reshape(1, -1)))
    return folded


# ------------------------------ reference ---------------------------------- #

def reference_forward(params, x_nchw, kernel):
    """Pure-JAX reference mirroring the PyTorch forward (unfused convs)."""
    pad = kernel // 2
    x = x_nchw
    for w, b in params["conv"]:
        y = lax.conv_general_dilated(
            x, w, (1, 1), [(pad, pad), (pad, pad)],
            dimension_numbers=("NCHW", "HWIO", "NCHW"),
            precision=lax.Precision.HIGHEST)
        x = jnp.maximum(y + b.reshape(1, -1, 1, 1), 0.0)
    x = x.reshape(x.shape[0], -1)
    for w, b in params["lin"][:-1]:
        x = jnp.maximum(
            jnp.dot(x, w, precision=lax.Precision.HIGHEST) + b, 0.0)
    w, b = params["lin"][-1]
    x = jax.nn.sigmoid(jnp.dot(x, w, precision=lax.Precision.HIGHEST) + b)
    return x.reshape(-1)


# --------------------------------- main ------------------------------------ #

if __name__ == "__main__":
    # ReversiCNN(size=8, convs=[4, 8], kernel=3, linear=[32])
    size = 8
    kernel = 3
    convs = [4, 8]
    linear_sizes = [32]
    batch = 4

    key = jax.random.PRNGKey(0)
    pkey, xkey = jax.random.split(key)
    params = init_params(pkey, size, convs, kernel, linear_sizes)
    folded = fold_params(params, size, kernel)

    # Reversi state: 2 input planes (own pieces / opponent pieces), NCHW.
    x = jax.random.uniform(xkey, (batch, 2, size, size), dtype=jnp.float32)

    fwd = jax.jit(reversi_cnn_forward)
    out = jax.block_until_ready(fwd(folded, x))
    ref = reference_forward(params, x, kernel)

    assert out.shape == (batch,), out.shape
    assert bool(jnp.all(jnp.isfinite(out)))
    # Kernel uses default (relaxed) MXU precision vs HIGHEST reference.
    assert jnp.allclose(out, ref, rtol=5e-3, atol=5e-3), (out, ref)

    print("KERNEL_OK")
</pallas_src>

<mosaic_0001>
module attributes {stable_mosaic.version = 11 : i64} {
  func.func @_fused_forward_kernel(%arg0: memref<4x128xf32, #tpu.memory_space<vmem>>, %arg1: memref<128x256xf32, #tpu.memory_space<vmem>>, %arg2: memref<1x256xf32, #tpu.memory_space<vmem>>, %arg3: memref<256x512xf32, #tpu.memory_space<vmem>>, %arg4: memref<1x512xf32, #tpu.memory_space<vmem>>, %arg5: memref<512x32xf32, #tpu.memory_space<vmem>>, %arg6: memref<1x32xf32, #tpu.memory_space<vmem>>, %arg7: memref<32x1xf32, #tpu.memory_space<vmem>>, %arg8: memref<1x1xf32, #tpu.memory_space<vmem>>, %arg9: memref<4x1xf32, #tpu.memory_space<vmem>>) attributes {dimension_semantics = [], scalar_prefetch = 0 : i64, scratch_operands = 0 : i64, tpu.core_type = #tpu.core_type<tc>} {
    %c0 = arith.constant 0 : index
    %c0_0 = arith.constant 0 : index
    %0 = vector.load %arg0[%c0, %c0_0] : memref<4x128xf32, #tpu.memory_space<vmem>>, vector<4x128xf32>
    %c0_1 = arith.constant 0 : index
    %c0_2 = arith.constant 0 : index
    %1 = vector.load %arg1[%c0_1, %c0_2] : memref<128x256xf32, #tpu.memory_space<vmem>>, vector<128x256xf32>
    %cst = arith.constant dense<0.000000e+00> : vector<4x256xf32>
    %2 = tpu.matmul %0, %1, %cst {dimension_numbers = #tpu.dot_dimension_numbers<[1], [0], [0], [1], [0, 0, 1, 1], [], []>} : vector<4x128xf32>, vector<128x256xf32>, vector<4x256xf32> -> vector<4x256xf32>
    %c0_3 = arith.constant 0 : index
    %c0_4 = arith.constant 0 : index
    %3 = vector.load %arg2[%c0_3, %c0_4] : memref<1x256xf32, #tpu.memory_space<vmem>>, vector<1x256xf32>
    %4 = vector.broadcast %3 : vector<1x256xf32> to vector<4x256xf32>
    %5 = arith.addf %2, %4 : vector<4x256xf32>
    %cst_5 = arith.constant 0.000000e+00 : f32
    %6 = vector.broadcast %cst_5 : f32 to vector<4x256xf32>
    %7 = arith.maximumf %5, %6 : vector<4x256xf32>
    %c0_6 = arith.constant 0 : index
    %c0_7 = arith.constant 0 : index
    %8 = vector.load %arg3[%c0_6, %c0_7] : memref<256x512xf32, #tpu.memory_space<vmem>>, vector<256x512xf32>
    %cst_8 = arith.constant dense<0.000000e+00> : vector<4x512xf32>
    %9 = tpu.matmul %7, %8, %cst_8 {dimension_numbers = #tpu.dot_dimension_numbers<[1], [0], [0], [1], [0, 0, 1, 1], [], []>} : vector<4x256xf32>, vector<256x512xf32>, vector<4x512xf32> -> vector<4x512xf32>
    %c0_9 = arith.constant 0 : index
    %c0_10 = arith.constant 0 : index
    %10 = vector.load %arg4[%c0_9, %c0_10] : memref<1x512xf32, #tpu.memory_space<vmem>>, vector<1x512xf32>
    %11 = vector.broadcast %10 : vector<1x512xf32> to vector<4x512xf32>
    %12 = arith.addf %9, %11 : vector<4x512xf32>
    %cst_11 = arith.constant 0.000000e+00 : f32
    %13 = vector.broadcast %cst_11 : f32 to vector<4x512xf32>
    %14 = arith.maximumf %12, %13 : vector<4x512xf32>
    %c0_12 = arith.constant 0 : index
    %c0_13 = arith.constant 0 : index
    %15 = vector.load %arg5[%c0_12, %c0_13] : memref<512x32xf32, #tpu.memory_space<vmem>>, vector<512x32xf32>
    %cst_14 = arith.constant dense<0.000000e+00> : vector<4x32xf32>
    %16 = tpu.matmul %14, %15, %cst_14 {dimension_numbers = #tpu.dot_dimension_numbers<[1], [0], [0], [1], [0, 0, 1, 1], [], []>} : vector<4x512xf32>, vector<512x32xf32>, vector<4x32xf32> -> vector<4x32xf32>
    %c0_15 = arith.constant 0 : index
    %c0_16 = arith.constant 0 : index
    %17 = vector.load %arg6[%c0_15, %c0_16] : memref<1x32xf32, #tpu.memory_space<vmem>>, vector<1x32xf32>
    %18 = vector.broadcast %17 : vector<1x32xf32> to vector<4x32xf32>
    %19 = arith.addf %16, %18 : vector<4x32xf32>
    %cst_17 = arith.constant 0.000000e+00 : f32
    %20 = vector.broadcast %cst_17 : f32 to vector<4x32xf32>
    %21 = arith.maximumf %19, %20 : vector<4x32xf32>
    %c0_18 = arith.constant 0 : index
    %c0_19 = arith.constant 0 : index
    %22 = vector.load %arg7[%c0_18, %c0_19] : memref<32x1xf32, #tpu.memory_space<vmem>>, vector<32x1xf32>
    %cst_20 = arith.constant dense<0.000000e+00> : vector<4x1xf32>
    %23 = tpu.matmul %21, %22, %cst_20 {dimension_numbers = #tpu.dot_dimension_numbers<[1], [0], [0], [1], [0, 0, 1, 1], [], []>} : vector<4x32xf32>, vector<32x1xf32>, vector<4x1xf32> -> vector<4x1xf32>
    %c0_21 = arith.constant 0 : index
    %c0_22 = arith.constant 0 : index
    %24 = vector.load %arg8[%c0_21, %c0_22] : memref<1x1xf32, #tpu.memory_space<vmem>>, vector<1x1xf32>
    %25 = vector.broadcast %24 : vector<1x1xf32> to vector<4x1xf32>
    %26 = arith.addf %23, %25 : vector<4x1xf32>
    %cst_23 = arith.constant 5.000000e-01 : f32
    %27 = vector.broadcast %cst_23 : f32 to vector<4x1xf32>
    %28 = arith.mulf %27, %26 : vector<4x1xf32>
    %29 = math.tanh %28 : vector<4x1xf32>
    %cst_24 = arith.constant 5.000000e-01 : f32
    %30 = vector.broadcast %cst_24 : f32 to vector<4x1xf32>
    %31 = arith.mulf %30, %29 : vector<4x1xf32>
    %cst_25 = arith.constant 5.000000e-01 : f32
    %32 = vector.broadcast %cst_25 : f32 to vector<4x1xf32>
    %33 = arith.addf %31, %32 : vector<4x1xf32>
    %c0_26 = arith.constant 0 : index
    %c0_27 = arith.constant 0 : index
    %34 = vector.load %arg9[%c0_26, %c0_27] : memref<4x1xf32, #tpu.memory_space<vmem>>, vector<4x1xf32>
    tpu.vector_store %arg9[%c0_26, %c0_27], %33 {strides = array<i32>} : memref<4x1xf32, #tpu.memory_space<vmem>>, vector<4x1xf32>,
    return
  }
}

</mosaic_0001>

<bundles_post_ra>
// kernel: reversi_cnn_forward.1
= control target key start
LH: loop header
LB: loop body
LE: loop exit
PB: predicated region body
PF: predicated region fallthrough
CT: control target
= control target key end

     0   :  { %s1033_s0 = inlined_call_operand.vmem [shape: f32[4,128], index: 0, kind: input, shape index: {}]   ;;  %s1034_s1 = inlined_call_operand.vmem [shape: f32[128,256], index: 1, kind: input, shape index: {}]   ;;  %s1035_s2 = inlined_call_operand.vmem [shape: f32[1,256], index: 2, kind: input, shape index: {}]   ;;  %s1036_s3 = inlined_call_operand.hbm [shape: f32[256,512], index: 3, kind: input, shape index: {}]   ;;  %s1037_s4 = inlined_call_operand.vmem [shape: f32[1,512], index: 4, kind: input, shape index: {}]   ;;  %s1038_s5 = inlined_call_operand.vmem [shape: f32[512,32], index: 5, kind: input, shape index: {}]   ;;  %s1039_s6 = inlined_call_operand.vmem [shape: f32[1,32], index: 6, kind: input, shape index: {}]   ;;  %s1040_s7 = inlined_call_operand.vmem [shape: f32[32,1], index: 7, kind: input, shape index: {}]   ;;  %s1041_s8 = inlined_call_operand.<no memory space> [shape: f32[1,1], index: 8, kind: input, shape index: {}]   ;;  %s1042_s9 = inlined_call_operand.vmem [shape: f32[4,1], index: 9, kind: output, shape index: {}]  }
   0x1   :  { %v14_v0 = vstv %s1041_s8 }
   0x2   :  { %15 = vst [vmem:[#allocation2] sm:$0x1] %v14_v0 }
   0x3   :  { %16 = vsyncpa [#allocation4], 0  ;;  %s27_s13 = sshll.u32 %s1036_s3, 4  ;;  %s659_s14 = smov [#allocation3]   ;;  %s28_s13 = int_to_ptr.hbm [resolvable:$true] %s27_s13 }
   0x4   :  { %s29_s15 = sshll.u32 %s659_s14, 4  ;;  %s660_s16 = smov 512   ;;  %s30_s15 = int_to_ptr.vmem [resolvable:$true] %s29_s15 }
   0x5   :  { %s661_s17 = smov 32  }
   0x6   :  { %35 = dma.hbm_to_vmem [thread:$0]  %s28_s13, 16384, %s30_s15, [#allocation4], %s660_s16, %s660_s16, %s661_s17  }
   0x7   :  { %657 = dma.done.wait [#allocation4], 16384  }
   0x8   :  { %658 = vsyncadd [#allocation4], 4294950912  ;;  %v81_v1 = vld [vmem:[%s1034_s1 + $0xf0] sm:$0xff]  ;;  %v82_v2 = vld [vmem:[%s1034_s1 + $0xf8] sm:$0xff]  ;;  %vm590_vm0 = vcmask 261120   ;;  %vm618_vm1 = vcmask 3072  }
   0x9   :  { %v79_v3 = vld [vmem:[%s1034_s1 + $0xe0] sm:$0xff]  ;;  %89 = vmatpush.msra.mxu0 %v81_v1  ;;  %109 = vmatpush.msra.mxu1 %v82_v2  ;;  %v80_v4 = vld [vmem:[%s1034_s1 + $0xe8] sm:$0xff]  ;;  %v77_v5 = vld [vmem:[%s1034_s1 + $0xd0] sm:$0xff] }
   0xa   :  { %v78_v6 = vld [vmem:[%s1034_s1 + $0xd8] sm:$0xff]  ;;  %v75_v7 = vld [vmem:[%s1034_s1 + $0xc0] sm:$0xff]  ;;  %v76_v8 = vld [vmem:[%s1034_s1 + $0xc8] sm:$0xff] }
   0xb   :  { %90 = vmatpush.msra.mxu0 %v79_v3  ;;  %110 = vmatpush.msra.mxu1 %v80_v4  ;;  %v73_v9 = vld [vmem:[%s1034_s1 + $0xb0] sm:$0xff]  ;;  %v74_v10 = vld [vmem:[%s1034_s1 + $0xb8] sm:$0xff]  ;;  %v71_v11 = vld [vmem:[%s1034_s1 + $0xa0] sm:$0xff] }
   0xc   :  { %v72_v12 = vld [vmem:[%s1034_s1 + $0xa8] sm:$0xff]  ;;  %v69_v13 = vld [vmem:[%s1034_s1 + $0x90] sm:$0xff]  ;;  %v70_v14 = vld [vmem:[%s1034_s1 + $0x98] sm:$0xff] }
   0xd   :  { %91 = vmatpush.msra.mxu0 %v77_v5  ;;  %111 = vmatpush.msra.mxu1 %v78_v6  ;;  %v67_v15 = vld [vmem:[%s1034_s1 + $0x80] sm:$0xff]  ;;  %v68_v18 = vld [vmem:[%s1034_s1 + $0x88] sm:$0xff]  ;;  %v65_v22 = vld [vmem:[%s1034_s1 + $0x70] sm:$0xff] }
   0xe   :  { %v191_v16 = vld [vmem:[#allocation3 + $0x1e0] sm:$0xff]  ;;  %v66_v23 = vld [vmem:[%s1034_s1 + $0x78] sm:$0xff]  ;;  %v61_v31 = vld [vmem:[%s1034_s1 + $0x50] sm:$0xff] }
   0xf   :  { %92 = vmatpush.msra.mxu0 %v75_v7  ;;  %112 = vmatpush.msra.mxu1 %v76_v8  ;;  %v255_v17 = vld [vmem:[#allocation3 + $0x3e0] sm:$0xff]  ;;  %v62_v32 = vld [vmem:[%s1034_s1 + $0x58] sm:$0xff]  ;;  %v57_v39 = vld [vmem:[%s1034_s1 + $0x30] sm:$0xff] }
  0x10   :  { %269 = vmatpush.msra.mxu2 %v191_v16  ;;  %289 = vmatpush.msra.mxu3 %v255_v17  ;;  %v187_v19 = vld [vmem:[#allocation3 + $0x1c0] sm:$0xff]  ;;  %v58_v40 = vld [vmem:[%s1034_s1 + $0x38] sm:$0xff]  ;;  %v53_v47 = vld [vmem:[%s1034_s1 + $0x10] sm:$0xff] }
  0x11   :  { %93 = vmatpush.msra.mxu0 %v73_v9  ;;  %113 = vmatpush.msra.mxu1 %v74_v10  ;;  %v251_v20 = vld [vmem:[#allocation3 + $0x3c0] sm:$0xff]  ;;  %v54_v48 = vld [vmem:[%s1034_s1 + $0x18] sm:$0xff]  ;;  %v192_v54 = vld [vmem:[#allocation3 + $0x1e8] sm:$0xff] }
  0x12   :  { %v183_v21 = vld [vmem:[#allocation3 + $0x1a0] sm:$0xff]  ;;  %270 = vmatpush.msra.mxu2 %v187_v19  ;;  %290 = vmatpush.msra.mxu3 %v251_v20  ;;  %v256_v55 = vld [vmem:[#allocation3 + $0x3e8] sm:$0xff]  ;;  %v193_v16 = vld [vmem:[#allocation3 + $0x1f0] sm:$0xff] }
  0x13   :  { %94 = vmatpush.msra.mxu0 %v71_v11  ;;  %114 = vmatpush.msra.mxu1 %v72_v12  ;;  %v247_v24 = vld [vmem:[#allocation3 + $0x3a0] sm:$0xff]  ;;  %v188_v58 = vld [vmem:[#allocation3 + $0x1c8] sm:$0xff]  ;;  %v257_v17 = vld [vmem:[#allocation3 + $0x3f0] sm:$0xff] }
  0x14   :  { %v179_v25 = vld [vmem:[#allocation3 + $0x180] sm:$0xff]  ;;  %271 = vmatpush.msra.mxu2 %v183_v21  ;;  %291 = vmatpush.msra.mxu3 %v247_v24  ;;  %v252_v59 = vld [vmem:[#allocation3 + $0x3c8] sm:$0xff]  ;;  %v189_v20 = vld [vmem:[#allocation3 + $0x1d0] sm:$0xff] }
  0x15   :  { %95 = vmatpush.msra.mxu0 %v69_v13  ;;  %115 = vmatpush.msra.mxu1 %v70_v14  ;;  %v243_v26 = vld [vmem:[#allocation3 + $0x380] sm:$0xff]  ;;  %v184_v62 = vld [vmem:[#allocation3 + $0x1a8] sm:$0xff]  ;;  %v253_v21 = vld [vmem:[#allocation3 + $0x3d0] sm:$0xff] }
  0x16   :  { %v63_v27 = vld [vmem:[%s1034_s1 + $0x60] sm:$0xff]  ;;  %v64_v28 = vld [vmem:[%s1034_s1 + $0x68] sm:$0xff]  ;;  %272 = vmatpush.msra.mxu2 %v179_v25  ;;  %292 = vmatpush.msra.mxu3 %v243_v26  ;;  %v185_v24 = vld [vmem:[#allocation3 + $0x1b0] sm:$0xff] }
  0x17   :  { %96 = vmatpush.msra.mxu0 %v67_v15  ;;  %116 = vmatpush.msra.mxu1 %v68_v18  ;;  %v175_v29 = vld [vmem:[#allocation3 + $0x160] sm:$0xff]  ;;  %v248_v63 = vld [vmem:[#allocation3 + $0x3a8] sm:$0xff]  ;;  %v249_v25 = vld [vmem:[#allocation3 + $0x3b0] sm:$0xff] }
  0x18   :  { %v239_v30 = vld [vmem:[#allocation3 + $0x360] sm:$0xff]  ;;  %273 = vmatpush.msra.mxu2 %v175_v29  ;;  %v180_v2 = vld [vmem:[#allocation3 + $0x188] sm:$0xff]  ;;  %v245_v29 = vld [vmem:[#allocation3 + $0x390] sm:$0xff] }
  0x19   :  { %97 = vmatpush.msra.mxu0 %v65_v22  ;;  %117 = vmatpush.msra.mxu1 %v66_v23  ;;  %v171_v33 = vld [vmem:[#allocation3 + $0x140] sm:$0xff]  ;;  %v244_v3 = vld [vmem:[#allocation3 + $0x388] sm:$0xff] }
  0x1a   :  { %v235_v34 = vld [vmem:[#allocation3 + $0x340] sm:$0xff]  ;;  %293 = vmatpush.msra.mxu3 %v239_v30  ;;  %274 = vmatpush.msra.mxu2 %v171_v33  ;;  %v176_v6 = vld [vmem:[#allocation3 + $0x168] sm:$0xff]  ;;  %v241_v33 = vld [vmem:[#allocation3 + $0x370] sm:$0xff] }
  0x1b   :  { %98 = vmatpush.msra.mxu0 %v63_v27  ;;  %118 = vmatpush.msra.mxu1 %v64_v28  ;;  %v59_v35 = vld [vmem:[%s1034_s1 + $0x40] sm:$0xff]  ;;  %v60_v36 = vld [vmem:[%s1034_s1 + $0x48] sm:$0xff]  ;;  %v181_v28 = vld [vmem:[#allocation3 + $0x190] sm:$0xff] }
  0x1c   :  { %v167_v37 = vld [vmem:[#allocation3 + $0x120] sm:$0xff]  ;;  %294 = vmatpush.msra.mxu3 %v235_v34  ;;  %v240_v7 = vld [vmem:[#allocation3 + $0x368] sm:$0xff] }
  0x1d   :  { %99 = vmatpush.msra.mxu0 %v61_v31  ;;  %119 = vmatpush.msra.mxu1 %v62_v32  ;;  %v231_v38 = vld [vmem:[#allocation3 + $0x320] sm:$0xff]  ;;  %v172_v10 = vld [vmem:[#allocation3 + $0x148] sm:$0xff]  ;;  %v177_v32 = vld [vmem:[#allocation3 + $0x170] sm:$0xff] }
  0x1e   :  { %v163_v41 = vld [vmem:[#allocation3 + $0x100] sm:$0xff]  ;;  %275 = vmatpush.msra.mxu2 %v167_v37  ;;  %295 = vmatpush.msra.mxu3 %v231_v38  ;;  %v236_v11 = vld [vmem:[#allocation3 + $0x348] sm:$0xff]  ;;  %v237_v37 = vld [vmem:[#allocation3 + $0x350] sm:$0xff] }
  0x1f   :  { %100 = vmatpush.msra.mxu0 %v59_v35  ;;  %120 = vmatpush.msra.mxu1 %v60_v36  ;;  %v227_v42 = vld [vmem:[#allocation3 + $0x300] sm:$0xff]  ;;  %v168_v14 = vld [vmem:[#allocation3 + $0x128] sm:$0xff]  ;;  %v173_v36 = vld [vmem:[#allocation3 + $0x150] sm:$0xff] }
  0x20   :  { %v55_v43 = vld [vmem:[%s1034_s1 + $0x20] sm:$0xff]  ;;  %v56_v44 = vld [vmem:[%s1034_s1 + $0x28] sm:$0xff]  ;;  %276 = vmatpush.msra.mxu2 %v163_v41  ;;  %296 = vmatpush.msra.mxu3 %v227_v42  ;;  %v233_v41 = vld [vmem:[#allocation3 + $0x330] sm:$0xff] }
  0x21   :  { %101 = vmatpush.msra.mxu0 %v57_v39  ;;  %121 = vmatpush.msra.mxu1 %v58_v40  ;;  %v159_v45 = vld [vmem:[#allocation3 + $0xe0] sm:$0xff]  ;;  %v232_v15 = vld [vmem:[#allocation3 + $0x328] sm:$0xff]  ;;  %v169_v40 = vld [vmem:[#allocation3 + $0x130] sm:$0xff] }
  0x22   :  { %v223_v46 = vld [vmem:[#allocation3 + $0x2e0] sm:$0xff]  ;;  %277 = vmatpush.msra.mxu2 %v159_v45  ;;  %v164_v18 = vld [vmem:[#allocation3 + $0x108] sm:$0xff]  ;;  %v229_v45 = vld [vmem:[#allocation3 + $0x310] sm:$0xff] }
  0x23   :  { %102 = vmatpush.msra.mxu0 %v55_v43  ;;  %122 = vmatpush.msra.mxu1 %v56_v44  ;;  %v155_v49 = vld [vmem:[#allocation3 + $0xc0] sm:$0xff]  ;;  %v228_v19 = vld [vmem:[#allocation3 + $0x308] sm:$0xff]  ;;  %v165_v44 = vld [vmem:[#allocation3 + $0x110] sm:$0xff] }
  0x24   :  { %v219_v50 = vld [vmem:[#allocation3 + $0x2c0] sm:$0xff]  ;;  %297 = vmatpush.msra.mxu3 %v223_v46  ;;  %278 = vmatpush.msra.mxu2 %v155_v49  ;;  %v160_v22 = vld [vmem:[#allocation3 + $0xe8] sm:$0xff]  ;;  %v225_v49 = vld [vmem:[#allocation3 + $0x2f0] sm:$0xff] }
  0x25   :  { %v51_v51 = vld [vmem:[%s1034_s1] sm:$0xff]  ;;  %v52_v52 = vld [vmem:[%s1034_s1 + $0x8] sm:$0xff]  ;;  %103 = vmatpush.msra.mxu0 %v53_v47  ;;  %123 = vmatpush.msra.mxu1 %v54_v48  ;;  %v161_v48 = vld [vmem:[#allocation3 + $0xf0] sm:$0xff] }
  0x26   :  { %v50_v53 = vld [vmem:[%s1033_s0] sm:$0xf]  ;;  %298 = vmatpush.msra.mxu3 %v219_v50  ;;  %v224_v23 = vld [vmem:[#allocation3 + $0x2e8] sm:$0xff] }
  0x27   :  { %104 = vmatpush.msra.mxu0 %v51_v51  ;;  %124 = vmatpush.msra.mxu1 %v52_v52  ;;  %v151_v56 = vld [vmem:[#allocation3 + $0xa0] sm:$0xff]  ;;  %v156_v26 = vld [vmem:[#allocation3 + $0xc8] sm:$0xff]  ;;  %v194_v52 = vld [vmem:[#allocation3 + $0x1f8] sm:$0xff] }
  0x28   :  { %v215_v57 = vld [vmem:[#allocation3 + $0x2a0] sm:$0xff]  ;;  %105 = vmatmul.f32.vlgmr.msra.gmra.mxu0 %v50_v53  ;;  %125 = vmatmul.f32.vlgmr.msra.gmra.mxu1 %v50_v53  ;;  %v220_v27 = vld [vmem:[#allocation3 + $0x2c8] sm:$0xff]  ;;  %v258_v53 = vld [vmem:[#allocation3 + $0x3f8] sm:$0xff] }
  0x29   :  { %309 = vmatpush.msrb.mxu0 %v192_v54  ;;  %329 = vmatpush.msrb.mxu1 %v256_v55  ;;  %v147_v60 = vld [vmem:[#allocation3 + $0x80] sm:$0xff]  ;;  %v152_v30 = vld [vmem:[#allocation3 + $0xa8] sm:$0xff]  ;;  %v190_v54 = vld [vmem:[#allocation3 + $0x1d8] sm:$0xff] }
  0x2a   :  { %v211_v61 = vld [vmem:[#allocation3 + $0x280] sm:$0xff]  ;;  %279 = vmatpush.msra.mxu2 %v151_v56  ;;  %299 = vmatpush.msra.mxu3 %v215_v57  ;;  %v216_v31 = vld [vmem:[#allocation3 + $0x2a8] sm:$0xff]  ;;  %v254_v55 = vld [vmem:[#allocation3 + $0x3d8] sm:$0xff] }
  0x2b   :  { %310 = vmatpush.msrb.mxu0 %v188_v58  ;;  %330 = vmatpush.msrb.mxu1 %v252_v59  ;;  %v143_v0 = vld [vmem:[#allocation3 + $0x60] sm:$0xff]  ;;  %v148_v34 = vld [vmem:[#allocation3 + $0x88] sm:$0xff]  ;;  %v186_v56 = vld [vmem:[#allocation3 + $0x1b8] sm:$0xff] }
  0x2c   :  { %v207_v1 = vld [vmem:[#allocation3 + $0x260] sm:$0xff]  ;;  %280 = vmatpush.msra.mxu2 %v147_v60  ;;  %300 = vmatpush.msra.mxu3 %v211_v61  ;;  %v212_v35 = vld [vmem:[#allocation3 + $0x288] sm:$0xff]  ;;  %v250_v57 = vld [vmem:[#allocation3 + $0x3b8] sm:$0xff] }
  0x2d   :  { %v139_v4 = vld [vmem:[#allocation3 + $0x40] sm:$0xff]  ;;  %311 = vmatpush.msrb.mxu0 %v184_v62  ;;  %331 = vmatpush.msrb.mxu1 %v248_v63  ;;  %v144_v38 = vld [vmem:[#allocation3 + $0x68] sm:$0xff]  ;;  %v182_v58 = vld [vmem:[#allocation3 + $0x198] sm:$0xff] }
  0x2e   :  { %v203_v5 = vld [vmem:[#allocation3 + $0x240] sm:$0xff]  ;;  %281 = vmatpush.msra.mxu2 %v143_v0  ;;  %301 = vmatpush.msra.mxu3 %v207_v1  ;;  %v208_v39 = vld [vmem:[#allocation3 + $0x268] sm:$0xff]  ;;  %v246_v59 = vld [vmem:[#allocation3 + $0x398] sm:$0xff] }
  0x2f   :  { %312 = vmatpush.msrb.mxu0 %v180_v2  ;;  %332 = vmatpush.msrb.mxu1 %v244_v3  ;;  %v135_v8 = vld [vmem:[#allocation3 + $0x20] sm:$0xff]  ;;  %v140_v42 = vld [vmem:[#allocation3 + $0x48] sm:$0xff]  ;;  %v178_v60 = vld [vmem:[#allocation3 + $0x178] sm:$0xff] }
  0x30   :  { %v199_v9 = vld [vmem:[#allocation3 + $0x220] sm:$0xff]  ;;  %282 = vmatpush.msra.mxu2 %v139_v4  ;;  %302 = vmatpush.msra.mxu3 %v203_v5  ;;  %v204_v43 = vld [vmem:[#allocation3 + $0x248] sm:$0xff]  ;;  %v242_v61 = vld [vmem:[#allocation3 + $0x378] sm:$0xff] }
  0x31   :  { %313 = vmatpush.msrb.mxu0 %v176_v6  ;;  %333 = vmatpush.msrb.mxu1 %v240_v7  ;;  %v131_v12 = vld [vmem:[#allocation3] sm:$0xff]  ;;  %v136_v46 = vld [vmem:[#allocation3 + $0x28] sm:$0xff]  ;;  %v174_v62 = vld [vmem:[#allocation3 + $0x158] sm:$0xff] }
  0x32   :  { %v195_v13 = vld [vmem:[#allocation3 + $0x200] sm:$0xff]  ;;  %283 = vmatpush.msra.mxu2 %v135_v8  ;;  %303 = vmatpush.msra.mxu3 %v199_v9  ;;  %v200_v47 = vld [vmem:[#allocation3 + $0x228] sm:$0xff]  ;;  %v238_v63 = vld [vmem:[#allocation3 + $0x358] sm:$0xff] }
  0x33   :  { %314 = vmatpush.msrb.mxu0 %v172_v10  ;;  %334 = vmatpush.msrb.mxu1 %v236_v11  ;;  %v132_v50 = vld [vmem:[#allocation3 + $0x8] sm:$0xff]  ;;  %v170_v0 = vld [vmem:[#allocation3 + $0x138] sm:$0xff]  ;;  %v157_v6 = vld [vmem:[#allocation3 + $0xd0] sm:$0xff] }
  0x34   :  { %284 = vmatpush.msra.mxu2 %v131_v12  ;;  %304 = vmatpush.msra.mxu3 %v195_v13  ;;  %v196_v51 = vld [vmem:[#allocation3 + $0x208] sm:$0xff]  ;;  %v234_v1 = vld [vmem:[#allocation3 + $0x338] sm:$0xff]  ;;  %v221_v7 = vld [vmem:[#allocation3 + $0x2d0] sm:$0xff] }
  0x35   :  { %315 = vmatpush.msrb.mxu0 %v168_v14  ;;  %335 = vmatpush.msrb.mxu1 %v232_v15  ;;  %v166_v2 = vld [vmem:[#allocation3 + $0x118] sm:$0xff]  ;;  %v153_v10 = vld [vmem:[#allocation3 + $0xb0] sm:$0xff] }
  0x36   :  { %349 = vmatpush.msrb.mxu2 %v193_v16  ;;  %369 = vmatpush.msrb.mxu3 %v257_v17  ;;  %v230_v3 = vld [vmem:[#allocation3 + $0x318] sm:$0xff]  ;;  %v217_v11 = vld [vmem:[#allocation3 + $0x2b0] sm:$0xff] }
  0x37   :  { %316 = vmatpush.msrb.mxu0 %v164_v18  ;;  %336 = vmatpush.msrb.mxu1 %v228_v19  ;;  %v162_v4 = vld [vmem:[#allocation3 + $0xf8] sm:$0xff]  ;;  %v149_v14 = vld [vmem:[#allocation3 + $0x90] sm:$0xff] }
  0x38   :  { %350 = vmatpush.msrb.mxu2 %v189_v20  ;;  %370 = vmatpush.msrb.mxu3 %v253_v21  ;;  %v226_v5 = vld [vmem:[#allocation3 + $0x2f8] sm:$0xff]  ;;  %v213_v15 = vld [vmem:[#allocation3 + $0x290] sm:$0xff] }
  0x39   :  { %317 = vmatpush.msrb.mxu0 %v160_v22  ;;  %337 = vmatpush.msrb.mxu1 %v224_v23  ;;  %v158_v8 = vld [vmem:[#allocation3 + $0xd8] sm:$0xff]  ;;  %v145_v18 = vld [vmem:[#allocation3 + $0x70] sm:$0xff] }
  0x3a   :  { %351 = vmatpush.msrb.mxu2 %v185_v24  ;;  %371 = vmatpush.msrb.mxu3 %v249_v25  ;;  %v222_v9 = vld [vmem:[#allocation3 + $0x2d8] sm:$0xff]  ;;  %v209_v19 = vld [vmem:[#allocation3 + $0x270] sm:$0xff] }
  0x3b   :  { %318 = vmatpush.msrb.mxu0 %v156_v26  ;;  %338 = vmatpush.msrb.mxu1 %v220_v27  ;;  %v154_v12 = vld [vmem:[#allocation3 + $0xb8] sm:$0xff]  ;;  %v141_v22 = vld [vmem:[#allocation3 + $0x50] sm:$0xff] }
  0x3c   :  { %352 = vmatpush.msrb.mxu2 %v181_v28  ;;  %372 = vmatpush.msrb.mxu3 %v245_v29  ;;  %v218_v13 = vld [vmem:[#allocation3 + $0x2b8] sm:$0xff]  ;;  %v205_v23 = vld [vmem:[#allocation3 + $0x250] sm:$0xff] }
  0x3d   :  { %319 = vmatpush.msrb.mxu0 %v152_v30  ;;  %339 = vmatpush.msrb.mxu1 %v216_v31  ;;  %v150_v16 = vld [vmem:[#allocation3 + $0x98] sm:$0xff]  ;;  %v137_v26 = vld [vmem:[#allocation3 + $0x30] sm:$0xff] }
  0x3e   :  { %353 = vmatpush.msrb.mxu2 %v177_v32  ;;  %373 = vmatpush.msrb.mxu3 %v241_v33  ;;  %v214_v17 = vld [vmem:[#allocation3 + $0x298] sm:$0xff]  ;;  %v201_v27 = vld [vmem:[#allocation3 + $0x230] sm:$0xff] }
  0x3f   :  { %320 = vmatpush.msrb.mxu0 %v148_v34  ;;  %340 = vmatpush.msrb.mxu1 %v212_v35  ;;  %v146_v20 = vld [vmem:[#allocation3 + $0x78] sm:$0xff]  ;;  %v133_v30 = vld [vmem:[#allocation3 + $0x10] sm:$0xff] }
  0x40   :  { %354 = vmatpush.msrb.mxu2 %v173_v36  ;;  %374 = vmatpush.msrb.mxu3 %v237_v37  ;;  %v210_v21 = vld [vmem:[#allocation3 + $0x278] sm:$0xff]  ;;  %v197_v31 = vld [vmem:[#allocation3 + $0x210] sm:$0xff] }
  0x41   :  { %321 = vmatpush.msrb.mxu0 %v144_v38  ;;  %341 = vmatpush.msrb.mxu1 %v208_v39  ;;  %v142_v24 = vld [vmem:[#allocation3 + $0x58] sm:$0xff] }
  0x42   :  { %355 = vmatpush.msrb.mxu2 %v169_v40  ;;  %375 = vmatpush.msrb.mxu3 %v233_v41  ;;  %v206_v25 = vld [vmem:[#allocation3 + $0x258] sm:$0xff] }
  0x43   :  { %322 = vmatpush.msrb.mxu0 %v140_v42  ;;  %342 = vmatpush.msrb.mxu1 %v204_v43  ;;  %v138_v28 = vld [vmem:[#allocation3 + $0x38] sm:$0xff] }
  0x44   :  { %356 = vmatpush.msrb.mxu2 %v165_v44  ;;  %376 = vmatpush.msrb.mxu3 %v229_v45  ;;  %v202_v29 = vld [vmem:[#allocation3 + $0x238] sm:$0xff] }
  0x45   :  { %323 = vmatpush.msrb.mxu0 %v136_v46  ;;  %343 = vmatpush.msrb.mxu1 %v200_v47  ;;  %v134_v32 = vld [vmem:[#allocation3 + $0x18] sm:$0xff]  ;;  %v463_v47 = vld [vmem:[%s1038_s5 + $0xf0] sm:$0xff] }
  0x46   :  { %357 = vmatpush.msrb.mxu2 %v161_v48  ;;  %377 = vmatpush.msrb.mxu3 %v225_v49  ;;  %v198_v33 = vld [vmem:[#allocation3 + $0x218] sm:$0xff]  ;;  %v447_v48 = vld [vmem:[%s1038_s5 + $0x70] sm:$0xff] }
  0x47   :  { %324 = vmatpush.msrb.mxu0 %v132_v50  ;;  %344 = vmatpush.msrb.mxu1 %v196_v51  ;;  %v83_v34 = vld [vmem:[%s1035_s2] sm:$0x3]  ;;  %v464_v43 = vld [vmem:[%s1038_s5 + $0xf8] sm:$0xff]  ;;  %v495_v49 = vld [vmem:[%s1038_s5 + $0x1f0] sm:$0xff] }
  0x48   :  { %358 = vmatpush.msrb.mxu2 %v157_v6  ;;  %378 = vmatpush.msrb.mxu3 %v221_v7  ;;  %v85_v35 = vperm.slane %v83_v34, 0  ;;  %v86_v36 = vperm.slane %v83_v34, 1  ;;  %v448_v44 = vld [vmem:[%s1038_s5 + $0x78] sm:$0xff]  ;;  %v479_v50 = vld [vmem:[%s1038_s5 + $0x170] sm:$0xff]  ;;  %v462_v51 = vld [vmem:[%s1038_s5 + $0xe8] sm:$0xff] }
  0x49   :  { %389 = vmatpush.msra.mxu0 %v194_v52  ;;  %409 = vmatpush.msra.mxu1 %v258_v53  ;;  %v496_v45 = vld [vmem:[%s1038_s5 + $0x1f8] sm:$0xff]  ;;  %v446_v52 = vld [vmem:[%s1038_s5 + $0x68] sm:$0xff]  ;;  %v441_v6 = vld [vmem:[%s1038_s5 + $0x40] sm:$0xff] }
  0x4a   :  { %359 = vmatpush.msrb.mxu2 %v153_v10  ;;  %379 = vmatpush.msrb.mxu3 %v217_v11  ;;  %v480_v46 = vld [vmem:[%s1038_s5 + $0x178] sm:$0xff]  ;;  %v494_v53 = vld [vmem:[%s1038_s5 + $0x1e8] sm:$0xff]  ;;  %v489_v7 = vld [vmem:[%s1038_s5 + $0x1c0] sm:$0xff] }
  0x4b   :  { %390 = vmatpush.msra.mxu0 %v190_v54  ;;  %410 = vmatpush.msra.mxu1 %v254_v55  ;;  %v478_v54 = vld [vmem:[%s1038_s5 + $0x168] sm:$0xff]  ;;  %v461_v55 = vld [vmem:[%s1038_s5 + $0xe0] sm:$0xff]  ;;  %v455_v10 = vld [vmem:[%s1038_s5 + $0xb0] sm:$0xff] }
  0x4c   :  { %360 = vmatpush.msrb.mxu2 %v149_v14  ;;  %380 = vmatpush.msrb.mxu3 %v213_v15  ;;  %v454_v11 = vld [vmem:[%s1038_s5 + $0xa8] sm:$0xff]  ;;  %v452_v14 = vld [vmem:[%s1038_s5 + $0x98] sm:$0xff]  ;;  %v475_v15 = vld [vmem:[%s1038_s5 + $0x150] sm:$0xff] }
  0x4d   :  { %391 = vmatpush.msra.mxu0 %v186_v56  ;;  %411 = vmatpush.msra.mxu1 %v250_v57  ;;  %v445_v56 = vld [vmem:[%s1038_s5 + $0x60] sm:$0xff]  ;;  %v483_v34 = vld [vmem:[%s1038_s5 + $0x190] sm:$0xff] }
  0x4e   :  { %361 = vmatpush.msrb.mxu2 %v145_v18  ;;  %381 = vmatpush.msrb.mxu3 %v209_v19  ;;  %v493_v57 = vld [vmem:[%s1038_s5 + $0x1e0] sm:$0xff]  ;;  %v451_v18 = vld [vmem:[%s1038_s5 + $0x90] sm:$0xff]  ;;  %v474_v19 = vld [vmem:[%s1038_s5 + $0x148] sm:$0xff] }
  0x4f   :  { %392 = vmatpush.msra.mxu0 %v182_v58  ;;  %412 = vmatpush.msra.mxu1 %v246_v59  ;;  %v477_v58 = vld [vmem:[%s1038_s5 + $0x160] sm:$0xff]  ;;  %v460_v59 = vld [vmem:[%s1038_s5 + $0xd8] sm:$0xff] }
  0x50   :  { %362 = vmatpush.msrb.mxu2 %v141_v22  ;;  %382 = vmatpush.msrb.mxu3 %v205_v23  ;;  %v450_v22 = vld [vmem:[%s1038_s5 + $0x88] sm:$0xff]  ;;  %v473_v23 = vld [vmem:[%s1038_s5 + $0x140] sm:$0xff] }
  0x51   :  { %393 = vmatpush.msra.mxu0 %v178_v60  ;;  %413 = vmatpush.msra.mxu1 %v242_v61  ;;  %v444_v60 = vld [vmem:[%s1038_s5 + $0x58] sm:$0xff] }
  0x52   :  { %363 = vmatpush.msrb.mxu2 %v137_v26  ;;  %383 = vmatpush.msrb.mxu3 %v201_v27  ;;  %v492_v61 = vld [vmem:[%s1038_s5 + $0x1d8] sm:$0xff]  ;;  %v449_v26 = vld [vmem:[%s1038_s5 + $0x80] sm:$0xff] }
  0x53   :  { %394 = vmatpush.msra.mxu0 %v174_v62  ;;  %414 = vmatpush.msra.mxu1 %v238_v63  ;;  %v476_v62 = vld [vmem:[%s1038_s5 + $0x158] sm:$0xff]  ;;  %v459_v63 = vld [vmem:[%s1038_s5 + $0xd0] sm:$0xff] }
  0x54   :  { %364 = vmatpush.msrb.mxu2 %v133_v30  ;;  %384 = vmatpush.msrb.mxu3 %v197_v31  ;;  %v472_v27 = vld [vmem:[%s1038_s5 + $0x138] sm:$0xff]  ;;  %v471_v30 = vld [vmem:[%s1038_s5 + $0x130] sm:$0xff] }
  0x55   :  { %395 = vmatpush.msra.mxu0 %v170_v0  ;;  %415 = vmatpush.msra.mxu1 %v234_v1  ;;  %v443_v0 = vld [vmem:[%s1038_s5 + $0x50] sm:$0xff]  ;;  %v484_v31 = vld [vmem:[%s1038_s5 + $0x198] sm:$0xff] }
  0x56   :  { %v491_v1 = vld [vmem:[%s1038_s5 + $0x1d0] sm:$0xff] }
  0x57   :  { %396 = vmatpush.msra.mxu0 %v166_v2  ;;  %416 = vmatpush.msra.mxu1 %v230_v3  ;;  %v458_v2 = vld [vmem:[%s1038_s5 + $0xc8] sm:$0xff] }
  0x58   :  { %v442_v3 = vld [vmem:[%s1038_s5 + $0x48] sm:$0xff] }
  0x59   :  { %397 = vmatpush.msra.mxu0 %v162_v4  ;;  %417 = vmatpush.msra.mxu1 %v226_v5  ;;  %v490_v4 = vld [vmem:[%s1038_s5 + $0x1c8] sm:$0xff]  ;;  %v457_v5 = vld [vmem:[%s1038_s5 + $0xc0] sm:$0xff] }
  0x5b   :  { %398 = vmatpush.msra.mxu0 %v158_v8  ;;  %418 = vmatpush.msra.mxu1 %v222_v9  ;;  %v456_v8 = vld [vmem:[%s1038_s5 + $0xb8] sm:$0xff] }
  0x5c   :  { %v440_v9 = vld [vmem:[%s1038_s5 + $0x38] sm:$0xff] }
  0x5d   :  { %399 = vmatpush.msra.mxu0 %v154_v12  ;;  %419 = vmatpush.msra.mxu1 %v218_v13  ;;  %v453_v12 = vld [vmem:[%s1038_s5 + $0xa0] sm:$0xff]  ;;  %v439_v13 = vld [vmem:[%s1038_s5 + $0x30] sm:$0xff] }
  0x5f   :  { %400 = vmatpush.msra.mxu0 %v150_v16  ;;  %420 = vmatpush.msra.mxu1 %v214_v17  ;;  %v488_v16 = vld [vmem:[%s1038_s5 + $0x1b8] sm:$0xff]  ;;  %v438_v17 = vld [vmem:[%s1038_s5 + $0x28] sm:$0xff] }
  0x61   :  { %401 = vmatpush.msra.mxu0 %v146_v20  ;;  %421 = vmatpush.msra.mxu1 %v210_v21  ;;  %v487_v20 = vld [vmem:[%s1038_s5 + $0x1b0] sm:$0xff]  ;;  %v437_v21 = vld [vmem:[%s1038_s5 + $0x20] sm:$0xff] }
  0x63   :  { %402 = vmatpush.msra.mxu0 %v142_v24  ;;  %422 = vmatpush.msra.mxu1 %v206_v25  ;;  %v486_v24 = vld [vmem:[%s1038_s5 + $0x1a8] sm:$0xff]  ;;  %v436_v25 = vld [vmem:[%s1038_s5 + $0x18] sm:$0xff] }
  0x65   :  { %403 = vmatpush.msra.mxu0 %v138_v28  ;;  %423 = vmatpush.msra.mxu1 %v202_v29  ;;  %v485_v28 = vld [vmem:[%s1038_s5 + $0x1a0] sm:$0xff]  ;;  %v435_v29 = vld [vmem:[%s1038_s5 + $0x10] sm:$0xff] }
  0x67   :  { %404 = vmatpush.msra.mxu0 %v134_v32  ;;  %424 = vmatpush.msra.mxu1 %v198_v33  ;;  %v434_v32 = vld [vmem:[%s1038_s5 + $0x8] sm:$0xff] }
  0x68   :  { %v470_v33 = vld [vmem:[%s1038_s5 + $0x128] sm:$0xff] }
  0xa5   :  { %v106_v37 = vpop.f32.mrf.mxu0  ;;  %v126_v38 = vpop.f32.mrf.mxu1 }
  0xa6   :  { %v107_v39 = vadd.f32 %v106_v37, %v85_v35  ;;  %v127_v40 = vadd.f32 %v126_v38, %v86_v36  ;;  %v433_v35 = vld [vmem:[%s1038_s5] sm:$0xff]  ;;  %v482_v37 = vld [vmem:[%s1038_s5 + $0x188] sm:$0xff]  ;;  %v468_v38 = vld [vmem:[%s1038_s5 + $0x118] sm:$0xff] }
  0xa7   :  { %v469_v36 = vld [vmem:[%s1038_s5 + $0x120] sm:$0xff] }
  0xa8   :  { %v129_v41 = vmax.f32 %v107_v39, 0.0  ;;  %v130_v42 = vmax.f32 %v127_v40, 0.0  ;;  %v481_v39 = vld [vmem:[%s1038_s5 + $0x180] sm:$0xff]  ;;  %v467_v40 = vld [vmem:[%s1038_s5 + $0x110] sm:$0xff] }
  0xaa   :  { %285 = vmatmul.f32.vlgmr.msra.gmra.mxu2 %v129_v41  ;;  %305 = vmatmul.f32.vlgmr.msra.gmra.mxu3 %v130_v42 }
  0xab   :  { %325 = vmatmul.f32.vlgmr.msrb.gmra.mxu0 %v129_v41  ;;  %345 = vmatmul.f32.vlgmr.msrb.gmra.mxu1 %v130_v42 }
  0xac   :  { %521 = vmatpush.msra.mxu3 %v464_v43  ;;  %501 = vmatpush.msra.mxu2 %v448_v44  ;;  %v259_v43 = vld [vmem:[%s1037_s4] sm:$0xf] }
  0xad   :  { %561 = vmatpush.msrb.mxu1 %v496_v45  ;;  %541 = vmatpush.msrb.mxu0 %v480_v46  ;;  %v262_v44 = vperm.slane %v259_v43, 1 }
  0xae   :  { %522 = vmatpush.msra.mxu3 %v463_v47  ;;  %502 = vmatpush.msra.mxu2 %v447_v48  ;;  %v261_v48 = vperm.slane %v259_v43, 0 }
  0xaf   :  { %562 = vmatpush.msrb.mxu1 %v495_v49  ;;  %542 = vmatpush.msrb.mxu0 %v479_v50 }
  0xb0   :  { %523 = vmatpush.msra.mxu3 %v462_v51  ;;  %503 = vmatpush.msra.mxu2 %v446_v52 }
  0xb1   :  { %563 = vmatpush.msrb.mxu1 %v494_v53  ;;  %543 = vmatpush.msrb.mxu0 %v478_v54  ;;  %v264_v53 = vperm.slane %v259_v43, 3 }
  0xb2   :  { %365 = vmatmul.f32.vlgmr.msrb.gmra.mxu2 %v129_v41  ;;  %385 = vmatmul.f32.vlgmr.msrb.gmra.mxu3 %v130_v42 }
  0xb3   :  { %405 = vmatmul.f32.vlgmr.msra.gmra.mxu0 %v129_v41  ;;  %425 = vmatmul.f32.vlgmr.msra.gmra.mxu1 %v130_v42  ;;  %v466_v41 = vld [vmem:[%s1038_s5 + $0x108] sm:$0xff]  ;;  %v465_v42 = vld [vmem:[%s1038_s5 + $0x100] sm:$0xff] }
  0xb4   :  { %524 = vmatpush.msra.mxu3 %v461_v55  ;;  %504 = vmatpush.msra.mxu2 %v445_v56 }
  0xb5   :  { %564 = vmatpush.msrb.mxu1 %v493_v57  ;;  %544 = vmatpush.msrb.mxu0 %v477_v58 }
  0xb6   :  { %525 = vmatpush.msra.mxu3 %v460_v59  ;;  %505 = vmatpush.msra.mxu2 %v444_v60  ;;  %v263_v60 = vperm.slane %v259_v43, 2 }
  0xb7   :  { %565 = vmatpush.msrb.mxu1 %v492_v61  ;;  %545 = vmatpush.msrb.mxu0 %v476_v62 }
  0xb8   :  { %526 = vmatpush.msra.mxu3 %v459_v63  ;;  %506 = vmatpush.msra.mxu2 %v443_v0 }
  0xb9   :  { %566 = vmatpush.msrb.mxu1 %v491_v1  ;;  %546 = vmatpush.msrb.mxu0 %v475_v15 }
  0xba   :  { %527 = vmatpush.msra.mxu3 %v458_v2  ;;  %507 = vmatpush.msra.mxu2 %v442_v3 }
  0xbb   :  { %567 = vmatpush.msrb.mxu1 %v490_v4  ;;  %547 = vmatpush.msrb.mxu0 %v474_v19  ;;  %v585_v4 = vld [vmem:[%s1040_s7 + $0x18] sm:$0xff] }
  0xbc   :  { %528 = vmatpush.msra.mxu3 %v457_v5  ;;  %508 = vmatpush.msra.mxu2 %v441_v6  ;;  %v584_v5 = vld [vmem:[%s1040_s7 + $0x10] sm:$0xff]  ;;  %v583_v6 = vld [vmem:[%s1040_s7 + $0x8] sm:$0xff] }
  0xbd   :  { %568 = vmatpush.msrb.mxu1 %v489_v7  ;;  %548 = vmatpush.msrb.mxu0 %v473_v23  ;;  %v582_v7 = vld [vmem:[%s1040_s7] sm:$0xff] }
  0xbe   :  { %529 = vmatpush.msra.mxu3 %v456_v8  ;;  %509 = vmatpush.msra.mxu2 %v440_v9  ;;  %v629_v8 = vld [vmem:[%s1039_s6] ss:$0 sm:$0xff] }
  0xbf   :  { %569 = vmatpush.msrb.mxu1 %v488_v16  ;;  %549 = vmatpush.msrb.mxu0 %v472_v27 }
  0xc0   :  { %530 = vmatpush.msra.mxu3 %v455_v10  ;;  %510 = vmatpush.msra.mxu2 %v439_v13 }
  0xc1   :  { %570 = vmatpush.msrb.mxu1 %v487_v20  ;;  %550 = vmatpush.msrb.mxu0 %v471_v30 }
  0xc2   :  { %531 = vmatpush.msra.mxu3 %v454_v11  ;;  %511 = vmatpush.msra.mxu2 %v438_v17 }
  0xc3   :  { %571 = vmatpush.msrb.mxu1 %v486_v24  ;;  %551 = vmatpush.msrb.mxu0 %v470_v33 }
  0xc4   :  { %532 = vmatpush.msra.mxu3 %v453_v12  ;;  %512 = vmatpush.msra.mxu2 %v437_v21 }
  0xc5   :  { %572 = vmatpush.msrb.mxu1 %v485_v28  ;;  %552 = vmatpush.msrb.mxu0 %v469_v36 }
  0xc6   :  { %533 = vmatpush.msra.mxu3 %v452_v14  ;;  %513 = vmatpush.msra.mxu2 %v436_v25 }
  0xc7   :  { %573 = vmatpush.msrb.mxu1 %v484_v31  ;;  %553 = vmatpush.msrb.mxu0 %v468_v38 }
  0xc8   :  { %534 = vmatpush.msra.mxu3 %v451_v18  ;;  %514 = vmatpush.msra.mxu2 %v435_v29  ;;  %v630_v18 = vld [vmem:[#allocation2] ss:$0 sm:$0xff] }
  0xc9   :  { %574 = vmatpush.msrb.mxu1 %v483_v34  ;;  %554 = vmatpush.msrb.mxu0 %v467_v40 }
  0xca   :  { %535 = vmatpush.msra.mxu3 %v450_v22  ;;  %515 = vmatpush.msra.mxu2 %v434_v32 }
  0xcb   :  { %575 = vmatpush.msrb.mxu1 %v482_v37  ;;  %555 = vmatpush.msrb.mxu0 %v466_v41 }
  0xcc   :  { %536 = vmatpush.msra.mxu3 %v449_v26  ;;  %516 = vmatpush.msra.mxu2 %v433_v35 }
  0xcd   :  { %576 = vmatpush.msrb.mxu1 %v481_v39  ;;  %556 = vmatpush.msrb.mxu0 %v465_v42 }
  0xce   :  { %606 = vmatpush.msrb.mxu2 %v585_v4 }
  0xd0   :  { %607 = vmatpush.msrb.mxu2 %v584_v5 }
  0xd2   :  { %608 = vmatpush.msrb.mxu2 %v583_v6 }
  0xd4   :  { %609 = vmatpush.msrb.mxu2 %v582_v7 }
 0x128   :  { %v326_v45 = vpop.f32.mrf.mxu0  ;;  %v346_v46 = vpop.f32.mrf.mxu1 }
 0x129   :  { %v327_v47 = vadd.f32 %v326_v45, %v262_v44 }
 0x12b   :  { %v347_v49 = vadd.f32 %v346_v46, %v327_v47 }
 0x12d   :  { %v430_v50 = vmax.f32 %v347_v49, 0.0  ;;  %v286_v51 = vpop.f32.mrf.mxu2  ;;  %v306_v52 = vpop.f32.mrf.mxu3 }
 0x12e   :  { %v287_v54 = vadd.f32 %v286_v51, %v261_v48 }
 0x12f   :  { %537 = vmatmul.f32.vlgmr.msra.gmra.mxu3 %v430_v50 }
 0x130   :  { %v307_v55 = vadd.f32 %v306_v52, %v287_v54  ;;  %v406_v56 = vpop.f32.mrf.mxu0  ;;  %v426_v59 = vpop.f32.mrf.mxu1 }
 0x131   :  { %v407_v57 = vadd.f32 %v406_v56, %v264_v53 }
 0x132   :  { %v429_v58 = vmax.f32 %v307_v55, 0.0 }
 0x133   :  { %v427_v61 = vadd.f32 %v426_v59, %v407_v57 }
 0x134   :  { %517 = vmatmul.f32.vlgmr.msra.gmra.mxu2 %v429_v58 }
 0x135   :  { %v432_v62 = vmax.f32 %v427_v61, 0.0  ;;  %v366_v63 = vpop.f32.mrf.mxu2  ;;  %v386_v1 = vpop.f32.mrf.mxu3 }
 0x136   :  { %v367_v0 = vadd.f32 %v366_v63, %v263_v60 }
 0x137   :  { %577 = vmatmul.f32.vlgmr.msrb.gmra.mxu1 %v432_v62 }
 0x138   :  { %v387_v2 = vadd.f32 %v386_v1, %v367_v0 }
 0x13a   :  { %v431_v3 = vmax.f32 %v387_v2, 0.0 }
 0x13c   :  { %557 = vmatmul.f32.vlgmr.msrb.gmra.mxu0 %v431_v3 }
 0x1b2   :  { %v538_v11 = vpop.f32.mrf.mxu3 }
 0x1b4   :  { %v578_v15 = vpop.f32.mrf.mxu1 }
 0x1b7   :  { %v518_v9 = vpop.f32.mrf.mxu2 }
 0x1b8   :  { %v519_v10 = vadd.f32 %v629_v8, %v518_v9 }
 0x1b9   :  { %v558_v13 = vpop.f32.mrf.mxu0 }
 0x1ba   :  { %v539_v12 = vadd.f32 %v538_v11, %v519_v10 }
 0x1bc   :  { %v559_v14 = vadd.f32 %v558_v13, %v539_v12 }
 0x1be   :  { %v579_v16 = vadd.f32 %v578_v15, %v559_v14 }
 0x1c0   :  { %v581_v17 = vmax.f32 %v579_v16, 0.0 }
 0x1c2   :  { %625 = vmatmul.msk.f32.vlgmr.msrb.gmra.mxu2 %vm590_vm0, %v581_v17 }
 0x245   :  { %v611_v19 = vpop.f32.mrf.mxu2 }
 0x246   :  { %v612_v20 = vadd.f32 %v630_v18, %v611_v19 }
 0x248   :  { %v614_v21 = vmul.f32 0.5, %v612_v20 }
 0x24a   :  { %631 = vtanh.f32 %v614_v21 }
 0x250   :  { %v632_v22 = vpop.eup %631 }
 0x251   :  { %v616_v23 = vmul.f32 0.5, %v632_v22 }
 0x253   :  { %v617_v24 = vadd.f32 0.5, %v616_v23 }
 0x255   :  { %619 = vst.msk [vmem:[%s1042_s9] sm:$0xf] %vm618_vm1, %v617_v24 }
 0x256   :  { %624 = vsyncpa [#allocation4], 1 }

</bundles_post_ra>
